<compile_context>
chip_gen: v5e
topology: v5e:2x2
jax: 0.10.0
libtpu: 0.0.40
codegen_flags: <defaults>
</compile_context>

<pallas_src>
import functools

import jax
import jax.numpy as jnp
from jax import lax
from jax.experimental import pallas as pl
from jax.experimental.pallas import tpu as pltpu


def _psc_lr_kernel(gl_ref, plg_ref, tgt_ref, cs_ref, out_ref, *, lam):
    # Upcast in-kernel (free on VPU; lets bf16 inputs stay bf16 over the DMA).
    gl = gl_ref[...].astype(jnp.float32)                 # (B, C)
    plg = plg_ref[...].astype(jnp.float32)               # (B, C, P) native layout
    tgt = tgt_ref[...]                                   # (B, 1) int32
    cs = cs_ref[...].astype(jnp.float32)                 # (B, P)

    B, C = gl.shape

    # ---- weights = softmax(consistency_scores, dim=1) ----------------------
    cs3 = cs[:, None, :]                                  # (B, 1, P)
    cs_max = jnp.max(cs3, axis=2, keepdims=True)
    cs_exp = jnp.exp(cs3 - cs_max)                        # (B, 1, P)
    w = cs_exp / jnp.sum(cs_exp, axis=2, keepdims=True)   # (B, 1, P)

    # ---- part softmax over classes (axis=1) fused with the weights ---------
    p_max = jnp.max(plg, axis=1, keepdims=True)           # (B, 1, P)
    p_exp = jnp.exp(plg - p_max)                          # (B, C, P)
    p_den = jnp.sum(p_exp, axis=1, keepdims=True)         # (B, 1, P)
    scale = w / p_den                                      # (B, 1, P)  normalize * weight
    # ensemble_preds = sum_p softmax(part_logits)[:, :, p] * weights[:, p]
    ensemble = jnp.sum(p_exp * scale, axis=2)              # (B, C)

    # ---- one-hot targets, refined targets -----------------------------------
    class_ids = lax.broadcasted_iota(jnp.int32, (B, C), 1)
    onehot = (class_ids == tgt).astype(jnp.float32)        # (B, C)
    refined = lam * onehot + (1.0 - lam) * ensemble        # (B, C)

    # ---- -log_softmax(global_logits, dim=1) ----------------------------------
    g_max = jnp.max(gl, axis=1, keepdims=True)
    g_sh = gl - g_max
    lse = jnp.log(jnp.sum(jnp.exp(g_sh), axis=1, keepdims=True))
    neg_log_g = lse - g_sh                                  # = -(log_softmax)

    # ---- loss = mean_b sum_c (refined * neg_log_g) ---------------------------
    per_sample = jnp.sum(refined * neg_log_g, axis=1, keepdims=True)   # (B, 1)
    out_ref[...] = jnp.sum(per_sample, axis=0, keepdims=True) * (1.0 / B)


@functools.partial(jax.jit, static_argnames=('lam',))
def psc_lr_loss(global_logits, part_logits, targets, consistency_scores,
                lam=0.5):
    """Pallas-backed PSC_LR forward. Returns the scalar loss as a JAX array.

    part_logits must be in the PyTorch layout (B, C, P); no wrapper-side
    transpose / dtype cast is performed.
    """
    B, C = global_logits.shape
    tgt = targets.astype(jnp.int32).reshape(B, 1)          # (B, 1), 32 bytes

    kernel = functools.partial(_psc_lr_kernel, lam=float(lam))
    out = pl.pallas_call(
        kernel,
        out_shape=jax.ShapeDtypeStruct((1, 1), jnp.float32),
        in_specs=[pl.BlockSpec(memory_space=pltpu.MemorySpace.VMEM)] * 4,
        out_specs=pl.BlockSpec(memory_space=pltpu.MemorySpace.VMEM),
    )(global_logits, part_logits, tgt, consistency_scores)
    return out[0, 0]


def _reference(global_logits, part_logits, targets, consistency_scores,
               lam=0.5):
    """Pure-JAX mirror of the PyTorch forward for a sanity check."""
    B, C = global_logits.shape
    onehot = jax.nn.one_hot(targets, C, dtype=jnp.float32)
    weights = jax.nn.softmax(consistency_scores, axis=1)[:, None, :]   # (B,1,P)
    part_preds = jax.nn.softmax(part_logits, axis=1)                   # (B,C,P)
    ensemble = jnp.sum(part_preds * weights, axis=2)                   # (B,C)
    refined = lam * onehot + (1.0 - lam) * ensemble
    log_g = jax.nn.log_softmax(global_logits, axis=1)
    return jnp.mean(jnp.sum(-refined * log_g, axis=1))


if __name__ == "__main__":
    key = jax.random.PRNGKey(0)
    k1, k2, k3, k4 = jax.random.split(key, 4)
    B, C, P = 8, 16, 6

    global_logits = jax.random.normal(k1, (B, C), jnp.float32)
    part_logits = jax.random.normal(k2, (B, C, P), jnp.float32)
    targets = jax.random.randint(k3, (B,), 0, C, dtype=jnp.int32)
    consistency_scores = jax.random.normal(k4, (B, P), jnp.float32)

    loss = psc_lr_loss(global_logits, part_logits, targets, consistency_scores)
    loss = jax.block_until_ready(loss)

    ref = _reference(global_logits, part_logits, targets, consistency_scores)
    assert abs(float(loss) - float(ref)) < 1e-3, (float(loss), float(ref))

    print("KERNEL_OK")
</pallas_src>

<mosaic_0001>
module attributes {stable_mosaic.version = 11 : i64} {
  func.func @_psc_lr_kernel(%arg0: memref<8x16xf32, #tpu.memory_space<vmem>>, %arg1: memref<8x16x6xf32, #tpu.memory_space<vmem>>, %arg2: memref<8x1xi32, #tpu.memory_space<vmem>>, %arg3: memref<8x6xf32, #tpu.memory_space<vmem>>, %arg4: memref<1x1xf32, #tpu.memory_space<vmem>>) attributes {dimension_semantics = [], scalar_prefetch = 0 : i64, scratch_operands = 0 : i64, tpu.core_type = #tpu.core_type<tc>} {
    %c0 = arith.constant 0 : index
    %c0_0 = arith.constant 0 : index
    %0 = vector.load %arg0[%c0, %c0_0] : memref<8x16xf32, #tpu.memory_space<vmem>>, vector<8x16xf32>
    %c0_1 = arith.constant 0 : index
    %c0_2 = arith.constant 0 : index
    %c0_3 = arith.constant 0 : index
    %1 = vector.load %arg1[%c0_1, %c0_2, %c0_3] : memref<8x16x6xf32, #tpu.memory_space<vmem>>, vector<8x16x6xf32>
    %c0_4 = arith.constant 0 : index
    %c0_5 = arith.constant 0 : index
    %2 = vector.load %arg2[%c0_4, %c0_5] : memref<8x1xi32, #tpu.memory_space<vmem>>, vector<8x1xi32>
    %c0_6 = arith.constant 0 : index
    %c0_7 = arith.constant 0 : index
    %3 = vector.load %arg3[%c0_6, %c0_7] : memref<8x6xf32, #tpu.memory_space<vmem>>, vector<8x6xf32>
    %4 = vector.shape_cast %3 : vector<8x6xf32> to vector<8x1x6xf32>
    %cst = arith.constant dense<0xFF800000> : vector<8x1xf32>
    %5 = vector.multi_reduction <maximumf>, %4, %cst [2] : vector<8x1x6xf32> to vector<8x1xf32>
    %6 = vector.shape_cast %5 : vector<8x1xf32> to vector<8x1x1xf32>
    %7 = vector.broadcast %6 : vector<8x1x1xf32> to vector<8x1x6xf32>
    %8 = arith.subf %4, %7 : vector<8x1x6xf32>
    %9 = math.exp %8 : vector<8x1x6xf32>
    %cst_8 = arith.constant dense<0.000000e+00> : vector<8x1xf32>
    %10 = vector.multi_reduction <add>, %9, %cst_8 [2] : vector<8x1x6xf32> to vector<8x1xf32>
    %11 = vector.shape_cast %10 : vector<8x1xf32> to vector<8x1x1xf32>
    %12 = vector.broadcast %11 : vector<8x1x1xf32> to vector<8x1x6xf32>
    %13 = arith.divf %9, %12 : vector<8x1x6xf32>
    %cst_9 = arith.constant dense<0xFF800000> : vector<8x6xf32>
    %14 = vector.multi_reduction <maximumf>, %1, %cst_9 [1] : vector<8x16x6xf32> to vector<8x6xf32>
    %15 = vector.shape_cast %14 : vector<8x6xf32> to vector<8x1x6xf32>
    %16 = vector.broadcast %15 : vector<8x1x6xf32> to vector<8x16x6xf32>
    %17 = arith.subf %1, %16 : vector<8x16x6xf32>
    %18 = math.exp %17 : vector<8x16x6xf32>
    %cst_10 = arith.constant dense<0.000000e+00> : vector<8x6xf32>
    %19 = vector.multi_reduction <add>, %18, %cst_10 [1] : vector<8x16x6xf32> to vector<8x6xf32>
    %20 = vector.shape_cast %19 : vector<8x6xf32> to vector<8x1x6xf32>
    %21 = arith.divf %13, %20 : vector<8x1x6xf32>
    %22 = vector.broadcast %21 : vector<8x1x6xf32> to vector<8x16x6xf32>
    %23 = arith.mulf %18, %22 : vector<8x16x6xf32>
    %cst_11 = arith.constant dense<0.000000e+00> : vector<8x16xf32>
    %24 = vector.multi_reduction <add>, %23, %cst_11 [2] : vector<8x16x6xf32> to vector<8x16xf32>
    %25 = tpu.iota {dimensions = array<i32: 1>} : vector<8x16xi32>
    %26 = vector.broadcast %2 : vector<8x1xi32> to vector<8x16xi32>
    %27 = arith.cmpi eq, %25, %26 : vector<8x16xi32>
    %28 = arith.extui %27 : vector<8x16xi1> to vector<8x16xi32>
    %29 = arith.sitofp %28 : vector<8x16xi32> to vector<8x16xf32>
    %cst_12 = arith.constant 5.000000e-01 : f32
    %30 = vector.broadcast %cst_12 : f32 to vector<8x16xf32>
    %31 = arith.mulf %30, %29 : vector<8x16xf32>
    %cst_13 = arith.constant 5.000000e-01 : f32
    %32 = vector.broadcast %cst_13 : f32 to vector<8x16xf32>
    %33 = arith.mulf %32, %24 : vector<8x16xf32>
    %34 = arith.addf %31, %33 : vector<8x16xf32>
    %cst_14 = arith.constant dense<0xFF800000> : vector<8xf32>
    %35 = vector.multi_reduction <maximumf>, %0, %cst_14 [1] : vector<8x16xf32> to vector<8xf32>
    %36 = vector.shape_cast %35 : vector<8xf32> to vector<8x1xf32>
    %37 = vector.broadcast %36 : vector<8x1xf32> to vector<8x16xf32>
    %38 = arith.subf %0, %37 : vector<8x16xf32>
    %39 = math.exp %38 : vector<8x16xf32>
    %cst_15 = arith.constant dense<0.000000e+00> : vector<8xf32>
    %40 = vector.multi_reduction <add>, %39, %cst_15 [1] : vector<8x16xf32> to vector<8xf32>
    %41 = vector.shape_cast %40 : vector<8xf32> to vector<8x1xf32>
    %42 = math.log %41 : vector<8x1xf32>
    %43 = vector.broadcast %42 : vector<8x1xf32> to vector<8x16xf32>
    %44 = arith.subf %43, %38 : vector<8x16xf32>
    %45 = arith.mulf %34, %44 : vector<8x16xf32>
    %cst_16 = arith.constant dense<0.000000e+00> : vector<8xf32>
    %46 = vector.multi_reduction <add>, %45, %cst_16 [1] : vector<8x16xf32> to vector<8xf32>
    %47 = vector.shape_cast %46 : vector<8xf32> to vector<8x1xf32>
    %cst_17 = arith.constant dense<0.000000e+00> : vector<1xf32>
    %48 = vector.multi_reduction <add>, %47, %cst_17 [0] : vector<8x1xf32> to vector<1xf32>
    %49 = vector.shape_cast %48 : vector<1xf32> to vector<1x1xf32>
    %cst_18 = arith.constant 1.250000e-01 : f32
    %50 = vector.broadcast %cst_18 : f32 to vector<1x1xf32>
    %51 = arith.mulf %49, %50 : vector<1x1xf32>
    %c0_19 = arith.constant 0 : index
    %c0_20 = arith.constant 0 : index
    %52 = vector.load %arg4[%c0_19, %c0_20] : memref<1x1xf32, #tpu.memory_space<vmem>>, vector<1x1xf32>
    tpu.vector_store %arg4[%c0_19, %c0_20], %51 {strides = array<i32>} : memref<1x1xf32, #tpu.memory_space<vmem>>, vector<1x1xf32>,
    return
  }
}

</mosaic_0001>

<bundles_post_ra>
// kernel: psc_lr_loss.1
= control target key start
LH: loop header
LB: loop body
LE: loop exit
PB: predicated region body
PF: predicated region fallthrough
CT: control target
= control target key end

     0   :  { %vm52_vm0 = vcmask 40960   ;;  %s1532_s0 = inlined_call_operand.vmem [shape: f32[8,16], index: 0, kind: input, shape index: {}]   ;;  %s1533_s1 = inlined_call_operand.vmem [shape: f32[8,16,6], index: 1, kind: input, shape index: {}]   ;;  %s1534_s2 = inlined_call_operand.vmem [shape: s32[8,1], index: 2, kind: input, shape index: {}]   ;;  %s1535_s3 = inlined_call_operand.vmem [shape: f32[8,6], index: 3, kind: input, shape index: {}]   ;;  %s1536_s4 = inlined_call_operand.hbm [shape: f32[1,1], index: 4, kind: output, shape index: {}]  }
   0x1   :  { %v36_v0 = vld [vmem:[%s1535_s3] sm:$0xff] }
   0x2   :  { %9 = vsyncpa [#allocation3], 0  ;;  %v53_v1 = vsel %vm52_vm0, %v36_v0, -inf  ;;  %v41_v2 = vrot.slane %v36_v0, 4  ;;  %v39_v3 = vrot.slane %v36_v0, 2  ;;  %v38_v6 = vrot.slane %v36_v0, 1 }
   0x3   :  { %54 = vmax.xlane.f32.xlu0 %v53_v1  ;;  %v42_v7 = vrot.slane %v36_v0, 5  ;;  %v40_v8 = vrot.slane %v36_v0, 3  ;;  %v43_v12 = vrot.slane %v36_v0, 6  ;;  %v44_v13 = vrot.slane %v36_v0, 7  ;;  %v953_v52 = vld [vmem:[%s1532_s0] sm:$0xff]  ;;  %v20_v59 = vld [vmem:[%s1533_s1 + $0x8] sm:$0xff] }
   0x4   :  { %v65_v4 = vsel %vm52_vm0, %v41_v2, -inf  ;;  %v59_v5 = vsel %vm52_vm0, %v39_v3, -inf  ;;  %v56_v9 = vsel %vm52_vm0, %v38_v6, -inf  ;;  %vm729_vm1 = vcmask 130048   ;;  %v19_v58 = vld [vmem:[%s1533_s1] sm:$0xff]  ;;  %s762_s25 = sshll.u32 %s1536_s4, 4  ;;  %s763_s25 = int_to_ptr.hbm [resolvable:$true] %s762_s25 }
   0x5   :  { %66 = vmax.xlane.f32.xlu2 %v65_v4  ;;  %60 = vmax.xlane.f32.xlu1 %v59_v5  ;;  %v68_v10 = vsel %vm52_vm0, %v42_v7, -inf  ;;  %v62_v11 = vsel %vm52_vm0, %v40_v8, -inf  ;;  %v71_v14 = vsel %vm52_vm0, %v43_v12, -inf  ;;  %v74_v15 = vsel %vm52_vm0, %v44_v13, -inf  ;;  %v21_v5 = vld [vmem:[%s1533_s1 + $0x10] sm:$0xff] }
   0x6   :  { %v730_v55 = vsel %vm729_vm1, %v953_v52, -inf  ;;  %vm245_vm2 = vcmask 48128  }
   0x7   :  { %v246_v60 = vsel %vm245_vm2, %v19_v58, -inf  ;;  %v247_v61 = vsel %vm245_vm2, %v20_v59, -inf }
   0x8   :  { %v248_v62 = vmax.f32 %v246_v60, %v247_v61 }
   0xa   :  { %v249_v63 = vrot.slane %v248_v62, 4 }
   0xb   :  { %57 = vmax.xlane.f32.xlu0 %v56_v9 }
   0xd   :  { %69 = vmax.xlane.f32.xlu2 %v68_v10  ;;  %63 = vmax.xlane.f32.xlu1 %v62_v11 }
  0x13   :  { %72 = vmax.xlane.f32.xlu0 %v71_v14  ;;  %v26_v14 = vld [vmem:[%s1533_s1 + $0x38] sm:$0xff] }
  0x15   :  { %75 = vmax.xlane.f32.xlu1 %v74_v15 }
  0x76   :  { %v55_v16 = vpop.xlane.xlu0 %54 }
  0x77   :  { %v77_v17 = vsub.f32 %v36_v0, %v55_v16  ;;  %v250_v0 = vmax.f32 %v248_v62, %v249_v63 }
  0x78   :  { %v67_v18 = vpop.xlane.xlu2 %66  ;;  %v61_v19 = vpop.xlane.xlu1 %60 }
  0x79   :  { %v85_v20 = vmul.f32 1.442695, %v77_v17  ;;  %v79_v21 = vsub.f32 %v39_v3, %v61_v19  ;;  %v81_v24 = vsub.f32 %v41_v2, %v67_v18  ;;  %v251_v1 = vrot.slane %v250_v0, 2  ;;  %v976_v2 = vld [vmem:[%s1533_s1 + $0x20] sm:$0xff]  ;;  %v981_v3 = vld [vmem:[%s1533_s1 + $0x28] sm:$0xff] }
  0x7a   :  { %v264_v9 = vsel %vm245_vm2, %v976_v2, -inf  ;;  %v265_v10 = vsel %vm245_vm2, %v981_v3, -inf  ;;  %v274_v17 = vsel %vm245_vm2, %v26_v14, -inf }
  0x7b   :  { %777 = vpow2.f32 %v85_v20  ;;  %v89_v22 = vmul.f32 1.442695, %v79_v21  ;;  %v93_v33 = vmul.f32 1.442695, %v81_v24  ;;  %v252_v4 = vmax.f32 %v250_v0, %v251_v1 }
  0x7c   :  { %v266_v15 = vmax.f32 %v264_v9, %v265_v10 }
  0x7d   :  { %779 = vpow2.f32 %v89_v22  ;;  %v253_v11 = vrot.slane %v252_v4, 1 }
  0x7e   :  { %v58_v23 = vpop.xlane.xlu0 %57  ;;  %v267_v21 = vrot.slane %v266_v15, 4 }
  0x7f   :  { %v78_v25 = vsub.f32 %v38_v6, %v58_v23  ;;  %v22_v6 = vld [vmem:[%s1533_s1 + $0x18] sm:$0xff]  ;;  %v254_v18 = vmax.f32 %v252_v4, %v253_v11 }
  0x80   :  { %v70_v26 = vpop.xlane.xlu2 %69  ;;  %v64_v27 = vpop.xlane.xlu1 %63 }
  0x81   :  { %v926_v28 = vpop.eup %777  ;;  %v87_v29 = vmul.f32 1.442695, %v78_v25  ;;  %v82_v30 = vsub.f32 %v42_v7, %v70_v26  ;;  %v80_v31 = vsub.f32 %v40_v8, %v64_v27  ;;  %v255_v7 = vsel %vm245_vm2, %v21_v5, -inf }
  0x82   :  { %v101_v32 = vsel %vm52_vm0, %v926_v28, 0.0  ;;  %v256_v8 = vsel %vm245_vm2, %v22_v6, -inf  ;;  %v318_v22 = vsub.f32 %v19_v58, %v254_v18  ;;  %v319_v23 = vsub.f32 %v20_v59, %v254_v18 }
  0x83   :  { %781 = vpow2.f32 %v87_v29  ;;  %v95_v34 = vmul.f32 1.442695, %v82_v30  ;;  %v91_v35 = vmul.f32 1.442695, %v80_v31  ;;  %102 = vadd.xlane.f32.xlu2 %v101_v32  ;;  %v930_v36 = vpop.eup %779  ;;  %v268_v26 = vmax.f32 %v266_v15, %v267_v21  ;;  %v1006_v32 = vld [vmem:[%s1533_s1 + $0x50] sm:$0xff] }
  0x84   :  { %v107_v37 = vsel %vm52_vm0, %v930_v36, 0.0  ;;  %v334_v27 = vmul.f32 1.442695, %v318_v22  ;;  %v336_v29 = vmul.f32 1.442695, %v319_v23 }
  0x85   :  { %783 = vpow2.f32 %v95_v34  ;;  %108 = vadd.xlane.f32.xlu1 %v107_v37  ;;  %v1011_v34 = vld [vmem:[%s1533_s1 + $0x58] sm:$0xff] }
  0x86   :  { %785 = vpow2.f32 %v91_v35  ;;  %v73_v38 = vpop.xlane.xlu0 %72 }
  0x87   :  { %787 = vpow2.f32 %v93_v33  ;;  %v83_v39 = vsub.f32 %v43_v12, %v73_v38  ;;  %v257_v12 = vmax.f32 %v255_v7, %v256_v8  ;;  %v269_v33 = vrot.slane %v268_v26, 2 }
  0x88   :  { %v76_v40 = vpop.xlane.xlu1 %75 }
  0x89   :  { %v934_v41 = vpop.eup %781  ;;  %v97_v42 = vmul.f32 1.442695, %v83_v39  ;;  %v84_v43 = vsub.f32 %v44_v13, %v76_v40  ;;  %v25_v13 = vld [vmem:[%s1533_s1 + $0x30] sm:$0xff]  ;;  %v258_v19 = vrot.slane %v257_v12, 4  ;;  %v270_v38 = vmax.f32 %v268_v26, %v269_v33 }
  0x8a   :  { %v104_v44 = vsel %vm52_vm0, %v934_v41, 0.0  ;;  %v273_v16 = vsel %vm245_vm2, %v25_v13, -inf  ;;  %v291_v39 = vsel %vm245_vm2, %v1006_v32, -inf  ;;  %v292_v40 = vsel %vm245_vm2, %v1011_v34, -inf }
  0x8b   :  { %v938_v45 = vpop.eup %783  ;;  %789 = vpow2.f32 %v97_v42  ;;  %105 = vadd.xlane.f32.xlu0 %v104_v44  ;;  %v99_v46 = vmul.f32 1.442695, %v84_v43  ;;  %v275_v20 = vmax.f32 %v273_v16, %v274_v17  ;;  %v259_v24 = vmax.f32 %v257_v12, %v258_v19 }
  0x8c   :  { %v940_v47 = vpop.eup %785  ;;  %v116_v48 = vsel %vm52_vm0, %v938_v45, 0.0  ;;  %v293_v44 = vmax.f32 %v291_v39, %v292_v40 }
  0x8d   :  { %v944_v49 = vpop.eup %787  ;;  %v110_v50 = vsel %vm52_vm0, %v940_v47, 0.0  ;;  %117 = vadd.xlane.f32.xlu1 %v116_v48  ;;  %791 = vpow2.f32 %v99_v46  ;;  %v276_v25 = vrot.slane %v275_v20, 4  ;;  %v260_v30 = vrot.slane %v259_v24, 2 }
  0x8e   :  { %111 = vadd.xlane.f32.xlu2 %v110_v50  ;;  %v113_v51 = vsel %vm52_vm0, %v944_v49, 0.0  ;;  %793 = vpow2.f32 %v334_v27  ;;  %v271_v46 = vrot.slane %v270_v38, 1 }
  0x8f   :  { %v277_v31 = vmax.f32 %v275_v20, %v276_v25  ;;  %v261_v35 = vmax.f32 %v259_v24, %v260_v30  ;;  %795 = vpow2.f32 %v336_v29 }
  0x91   :  { %v955_v53 = vpop.eup %789  ;;  %v278_v37 = vrot.slane %v277_v31, 2  ;;  %v262_v42 = vrot.slane %v261_v35, 1 }
  0x92   :  { %1540 = vst [vmem:[#allocation5_spill] sm:$0xff] %v955_v53  ;;  %v119_v54 = vsel %vm52_vm0, %v955_v53, 0.0 }
  0x93   :  { %114 = vadd.xlane.f32.xlu0 %v113_v51  ;;  %v961_v56 = vpop.eup %791  ;;  %v279_v43 = vmax.f32 %v277_v31, %v278_v37  ;;  %v263_v48 = vmax.f32 %v261_v35, %v262_v42  ;;  %v1020_v51 = vld [vmem:[%s1533_s1 + $0x40] sm:$0xff] }
  0x94   :  { %1541 = vst [vmem:[#allocation6_spill] sm:$0xff] %v961_v56  ;;  %v122_v57 = vsel %vm52_vm0, %v961_v56, 0.0  ;;  %v282_v58 = vsel %vm245_vm2, %v1020_v51, -inf  ;;  %v1031_v60 = vpop.eup %793 }
  0x95   :  { %731 = vmax.xlane.f32.xlu1 %v730_v55  ;;  %v280_v50 = vrot.slane %v279_v43, 1  ;;  %v294_v55 = vrot.slane %v293_v44, 4  ;;  %v320_v61 = vsub.f32 %v21_v5, %v263_v48  ;;  %v321_v62 = vsub.f32 %v22_v6, %v263_v48  ;;  %v1033_v1 = vpop.eup %795 }
  0x96   :  { %120 = vadd.xlane.f32.xlu2 %v119_v54  ;;  %v1025_v54 = vld [vmem:[%s1533_s1 + $0x48] sm:$0xff]  ;;  %v366_v4 = vsel %vm245_vm2, %v1031_v60, 0.0  ;;  %v367_v10 = vsel %vm245_vm2, %v1033_v1, 0.0 }
  0x97   :  { %v283_v59 = vsel %vm245_vm2, %v1025_v54, -inf  ;;  %v281_v63 = vmax.f32 %v279_v43, %v280_v50  ;;  %v295_v9 = vmax.f32 %v293_v44, %v294_v55  ;;  %v338_v11 = vmul.f32 1.442695, %v320_v61 }
  0x98   :  { %v284_v0 = vmax.f32 %v282_v58, %v283_v59  ;;  %v340_v12 = vmul.f32 1.442695, %v321_v62  ;;  %v368_v5 = vadd.f32 %v367_v10, %v366_v4 }
  0x99   :  { %v324_v15 = vsub.f32 %v25_v13, %v281_v63  ;;  %v325_v6 = vsub.f32 %v26_v14, %v281_v63  ;;  %797 = vpow2.f32 %v338_v11  ;;  %v296_v19 = vrot.slane %v295_v9, 2 }
  0x9a   :  { %v285_v18 = vrot.slane %v284_v0, 4  ;;  %v369_v20 = vrot.slane %v368_v5, 4  ;;  %799 = vpow2.f32 %v340_v12 }
  0x9b   :  { %123 = vadd.xlane.f32.xlu0 %v122_v57  ;;  %v272_v57 = vmax.f32 %v270_v38, %v271_v46  ;;  %v346_v17 = vmul.f32 1.442695, %v324_v15  ;;  %v348_v21 = vmul.f32 1.442695, %v325_v6  ;;  %v297_v22 = vmax.f32 %v295_v9, %v296_v19 }
  0x9c   :  { %v370_v23 = vadd.f32 %v369_v20, %v368_v5 }
  0x9d   :  { %v322_v7 = vsub.f32 %v976_v2, %v272_v57  ;;  %v323_v8 = vsub.f32 %v981_v3, %v272_v57  ;;  %801 = vpow2.f32 %v346_v17  ;;  %v286_v3 = vmax.f32 %v284_v0, %v285_v18 }
  0x9e   :  { %803 = vpow2.f32 %v348_v21  ;;  %v298_v25 = vrot.slane %v297_v22, 1  ;;  %v371_v13 = vrot.slane %v370_v23, 2 }
  0x9f   :  { %v342_v16 = vmul.f32 1.442695, %v322_v7  ;;  %v344_v2 = vmul.f32 1.442695, %v323_v8  ;;  %v287_v24 = vrot.slane %v286_v3, 2  ;;  %v1041_v14 = vpop.eup %797 }
  0xa0   :  { %v299_v27 = vmax.f32 %v297_v22, %v298_v25  ;;  %v1043_v29 = vpop.eup %799  ;;  %v372_v30 = vadd.f32 %v371_v13, %v370_v23  ;;  %v375_v31 = vsel %vm245_vm2, %v1041_v14, 0.0 }
  0xa1   :  { %805 = vpow2.f32 %v342_v16  ;;  %v288_v26 = vmax.f32 %v286_v3, %v287_v24  ;;  %v376_v35 = vsel %vm245_vm2, %v1043_v29, 0.0 }
  0xa2   :  { %807 = vpow2.f32 %v344_v2  ;;  %v328_v38 = vsub.f32 %v1006_v32, %v299_v27  ;;  %v329_v39 = vsub.f32 %v1011_v34, %v299_v27  ;;  %v373_v42 = vrot.slane %v372_v30, 1 }
  0xa3   :  { %v1047_v33 = vpop.eup %801  ;;  %v289_v37 = vrot.slane %v288_v26, 1  ;;  %v377_v43 = vadd.f32 %v376_v35, %v375_v31 }
  0xa4   :  { %v1053_v40 = vpop.eup %803  ;;  %v393_v44 = vsel %vm245_vm2, %v1047_v33, 0.0  ;;  %v1063_v57 = vadd.f32 %v373_v42, %v372_v30  ;;  %v354_v62 = vmul.f32 1.442695, %v328_v38  ;;  %v356_v63 = vmul.f32 1.442695, %v329_v39 }
  0xa5   :  { %v394_v48 = vsel %vm245_vm2, %v1053_v40, 0.0  ;;  %v290_v50 = vmax.f32 %v288_v26, %v289_v37  ;;  %v378_v32 = vrot.slane %v377_v43, 4 }
  0xa6   :  { %v395_v58 = vadd.f32 %v394_v48, %v393_v44  ;;  %809 = vrcp.f32 %v1063_v57  ;;  %vm443_vm3 = vweird.f32 %v1063_v57 }
  0xa7   :  { %v1057_v46 = vpop.eup %805  ;;  %v326_v61 = vsub.f32 %v1020_v51, %v290_v50  ;;  %v379_v0 = vadd.f32 %v378_v32, %v377_v43  ;;  %v327_v8 = vsub.f32 %v1025_v54, %v290_v50  ;;  %811 = vpow2.f32 %v354_v62  ;;  %v1075_v51 = vld [vmem:[%s1533_s1 + $0x60] sm:$0xff]  ;;  %v1080_v54 = vld [vmem:[%s1533_s1 + $0x68] sm:$0xff] }
  0xa8   :  { %v1061_v55 = vpop.eup %807  ;;  %v384_v34 = vsel %vm245_vm2, %v1057_v46, 0.0  ;;  %v396_v4 = vrot.slane %v395_v58, 4  ;;  %813 = vpow2.f32 %v356_v63  ;;  %v300_v19 = vsel %vm245_vm2, %v1075_v51, -inf }
  0xa9   :  { %v385_v59 = vsel %vm245_vm2, %v1061_v55, 0.0  ;;  %v380_v9 = vrot.slane %v379_v0, 2  ;;  %v350_v12 = vmul.f32 1.442695, %v326_v61  ;;  %v352_v6 = vmul.f32 1.442695, %v327_v8 }
  0xaa   :  { %v386_v7 = vadd.f32 %v385_v59, %v384_v34  ;;  %v397_v10 = vadd.f32 %v396_v4, %v395_v58  ;;  %v301_v3 = vsel %vm245_vm2, %v1080_v54, -inf  ;;  %v449_v4 = vand.u32 2147483648, %v1063_v57 }
  0xab   :  { %v381_v15 = vadd.f32 %v380_v9, %v379_v0  ;;  %815 = vpow2.f32 %v350_v12  ;;  %v302_v26 = vmax.f32 %v300_v19, %v301_v3  ;;  %v447_v0 = vand.u32 2147483647, %v1063_v57 }
  0xac   :  { %v387_v11 = vrot.slane %v386_v7, 4  ;;  %v398_v5 = vrot.slane %v397_v10, 2  ;;  %v1084_v20 = vpop.eup %809  ;;  %817 = vpow2.f32 %v352_v6 }
  0xad   :  { %v382_v17 = vrot.slane %v381_v15, 1  ;;  %v1090_v22 = vpop.eup %811  ;;  %v439_v13 = vmul.f32 %v1084_v20, %v1063_v57  ;;  %v303_v39 = vrot.slane %v302_v26, 4  ;;  %vm444_vm4 = vweird.f32 %v1084_v20 }
  0xae   :  { %v388_v16 = vadd.f32 %v387_v11, %v386_v7  ;;  %v399_v18 = vadd.f32 %v398_v5, %v397_v10  ;;  %1542 = vst [vmem:[#allocation7_spill] sm:$0xff] %v1090_v22  ;;  %v1092_v24 = vpop.eup %813  ;;  %v411_v31 = vsel %vm245_vm2, %v1090_v22, 0.0  ;;  %vm1131_vm5 = vmor %vm443_vm3, %vm444_vm4  ;;  %vm1138_vm6 = vcmp.eq.f32.partialorder %v447_v0, 8.507059e+37 }
  0xaf   :  { %v1086_v21 = vadd.f32 %v382_v17, %v381_v15  ;;  %v412_v35 = vsel %vm245_vm2, %v1092_v24, 0.0  ;;  %v440_v38 = vsub.f32 1.0, %v439_v13  ;;  %v304_v34 = vmax.f32 %v302_v26, %v303_v39 }
  0xb0   :  { %v400_v2 = vrot.slane %v399_v18, 1  ;;  %v389_v23 = vrot.slane %v388_v16, 2  ;;  %v413_v43 = vadd.f32 %v412_v35, %v411_v31 }
  0xb1   :  { %819 = vrcp.f32 %v1086_v21  ;;  %v1099_v27 = vpop.eup %815  ;;  %v441_v58 = vmul.f32 %v1084_v20, %v440_v38  ;;  %v305_v11 = vrot.slane %v304_v34, 2  ;;  %vm458_vm7 = vweird.f32 %v1086_v21 }
  0xb2   :  { %v1095_v25 = vadd.f32 %v400_v2, %v399_v18  ;;  %v390_v30 = vadd.f32 %v389_v23, %v388_v16  ;;  %v1105_v37 = vpop.eup %817  ;;  %v402_v48 = vsel %vm245_vm2, %v1099_v27, 0.0  ;;  %v414_v62 = vrot.slane %v413_v43, 4 }
  0xb3   :  { %v403_v50 = vsel %vm245_vm2, %v1105_v37, 0.0  ;;  %v442_v9 = vadd.f32 %v1084_v20, %v441_v58  ;;  %v450_v16 = vor.u32 1.1754944e-38, %v449_v4  ;;  %v1147_v2 = vmax.f32 %v304_v34, %v305_v11 }
  0xb4   :  { %821 = vrcp.f32 %v1095_v25  ;;  %v391_v44 = vrot.slane %v390_v30, 1  ;;  %v404_v61 = vadd.f32 %v403_v50, %v402_v48  ;;  %v415_v5 = vadd.f32 %v414_v62, %v413_v43 }
  0xb5   :  { %v446_v18 = vsel %vm1131_vm5, %v1084_v20, %v442_v9  ;;  %v464_v31 = vand.u32 2147483648, %v1086_v21  ;;  %vm488_vm10 = vweird.f32 %v1095_v25  ;;  %v494_v6 = vand.u32 2147483648, %v1095_v25 }
  0xb6   :  { %v1121_v63 = vadd.f32 %v391_v44, %v390_v30  ;;  %v405_v15 = vrot.slane %v404_v61, 4  ;;  %v416_v23 = vrot.slane %v415_v5, 2  ;;  %v462_v30 = vand.u32 2147483647, %v1086_v21 }
  0xb7   :  { %v1108_v42 = vpop.eup %819  ;;  %v1164_v39 = vsel %vm1138_vm6, %v450_v16, %v446_v18  ;;  %v465_v9 = vor.u32 1.1754944e-38, %v464_v31 }
  0xb8   :  { %v454_v32 = vmul.f32 %v1108_v42, %v1086_v21  ;;  %vm459_vm8 = vweird.f32 %v1108_v42  ;;  %v406_v3 = vadd.f32 %v405_v15, %v404_v61  ;;  %vm1188_vm12 = vcmp.eq.f32.partialorder %v462_v30, 8.507059e+37 }
  0xb9   :  { %vm1166_vm9 = vmor %vm458_vm7, %vm459_vm8  ;;  %vm473_vm5 = vweird.f32 %v1121_v63 }
  0xba   :  { %v1117_v59 = vpop.eup %821  ;;  %v455_v7 = vsub.f32 1.0, %v454_v32  ;;  %v407_v50 = vrot.slane %v406_v3, 2  ;;  %v1174_v32 = vadd.f32 %v416_v23, %v415_v5 }
  0xbb   :  { %v484_v10 = vmul.f32 %v1117_v59, %v1095_v25  ;;  %vm489_vm11 = vweird.f32 %v1117_v59 }
  0xbc   :  { %v456_v17 = vmul.f32 %v1108_v42, %v455_v7  ;;  %vm1203_vm14 = vmor %vm488_vm10, %vm489_vm11  ;;  %v1241_v7 = vor.u32 1.1754944e-38, %v494_v6  ;;  %v477_v6 = vand.u32 2147483647, %v1121_v63  ;;  %v418_v16 = vrot.slane %v1174_v32, 1 }
  0xbd   :  { %v485_v19 = vsub.f32 1.0, %v484_v10 }
  0xbe   :  { %v457_v26 = vadd.f32 %v1108_v42, %v456_v17 }
  0xbf   :  { %v486_v44 = vmul.f32 %v1117_v59, %v485_v19 }
  0xc0   :  { %v461_v4 = vsel %vm1166_vm9, %v1108_v42, %v457_v26 }
  0xc1   :  { %v1199_v15 = vadd.f32 %v1117_v59, %v486_v44  ;;  %v1221_v30 = vsel %vm1188_vm12, %v465_v9, %v461_v4  ;;  %v408_v9 = vadd.f32 %v407_v50, %v406_v3 }
  0xf6   :  { %v1125_v8 = vpop.xlane.xlu2 %102 }
  0xf7   :  { %823 = vrcp.f32 %v1125_v8  ;;  %v134_v21 = vand.u32 2147483647, %v1125_v8  ;;  %v136_v61 = vand.u32 2147483648, %v1125_v8  ;;  %vm130_vm13 = vweird.f32 %v1125_v8 }
  0xf8   :  { %825 = vrcp.f32 %v1121_v63  ;;  %v1136_v57 = vpop.xlane.xlu1 %108 }
  0xf9   :  { %827 = vrcp.f32 %v1136_v57  ;;  %v166_v42 = vand.u32 2147483648, %v1136_v57  ;;  %vm1211_vm0 = vcmp.eq.f32.partialorder %v134_v21, 8.507059e+37  ;;  %v137_v19 = vor.u32 1.1754944e-38, %v136_v61 }
  0xfa   :  { %vm160_vm3 = vweird.f32 %v1136_v57  ;;  %v164_v26 = vand.u32 2147483647, %v1136_v57 }
  0xfb   :  { %v1238_v4 = vor.u32 1.1754944e-38, %v166_v42 }
  0xfc   :  { %vm1253_vm8 = vcmp.eq.f32.partialorder %v164_v26, 8.507059e+37 }
  0xfd   :  { %v1151_v13 = vpop.eup %823 }
  0xfe   :  { %v1156_v35 = vpop.eup %825  ;;  %v126_v20 = vmul.f32 %v1151_v13, %v1125_v8  ;;  %v1160_v38 = vpop.xlane.xlu0 %105  ;;  %vm131_vm15 = vweird.f32 %v1151_v13 }
  0xff   :  { %829 = vrcp.f32 %v1160_v38  ;;  %v1176_v58 = vpop.eup %827  ;;  %v469_v10 = vmul.f32 %v1156_v35, %v1121_v63  ;;  %vm1234_vm4 = vmor %vm130_vm13, %vm131_vm15  ;;  %vm474_vm6 = vweird.f32 %v1156_v35  ;;  %vm145_vm7 = vweird.f32 %v1160_v38 }
 0x100   :  { %v127_v34 = vsub.f32 1.0, %v126_v20  ;;  %v1183_v0 = vpop.xlane.xlu1 %117  ;;  %v156_v12 = vmul.f32 %v1176_v58, %v1136_v57  ;;  %vm161_vm11 = vweird.f32 %v1176_v58  ;;  %vm1277_vm13 = vmor %vm473_vm5, %vm474_vm6 }
 0x101   :  { %v1181_v62 = vpop.xlane.xlu2 %111  ;;  %v470_v31 = vsub.f32 1.0, %v469_v10 }
 0x102   :  { %v128_v11 = vmul.f32 %v1151_v13, %v127_v34  ;;  %831 = vrcp.f32 %v1181_v62  ;;  %v157_v20 = vsub.f32 1.0, %v156_v12  ;;  %v492_v34 = vand.u32 2147483647, %v1095_v25 }
 0x103   :  { %v471_v42 = vmul.f32 %v1156_v35, %v470_v31  ;;  %vm175_vm9 = vweird.f32 %v1181_v62  ;;  %v409_v31 = vrot.slane %v408_v9, 1  ;;  %v181_v26 = vand.u32 2147483648, %v1181_v62 }
 0x104   :  { %v129_v17 = vadd.f32 %v1151_v13, %v128_v11  ;;  %v158_v3 = vmul.f32 %v1176_v58, %v157_v20  ;;  %v179_v20 = vand.u32 2147483647, %v1181_v62  ;;  %vm1314_vm6 = vcmp.eq.f32.partialorder %v492_v34, 8.507059e+37 }
 0x105   :  { %v1215_v23 = vpop.eup %829  ;;  %v182_v56 = vor.u32 1.1754944e-38, %v181_v26  ;;  %v1308_v57 = vadd.f32 %v409_v31, %v408_v9  ;;  %v1569_v9 = vand.u32 2147483648, %v1121_v63  ;;  %v1570_v63 = vrot.slane %v1147_v2, 1 }
 0x106   :  { %v141_v43 = vmul.f32 %v1215_v23, %v1160_v38  ;;  %v1225_v44 = vpop.xlane.xlu0 %114  ;;  %v133_v12 = vsel %vm1234_vm4, %v1151_v13, %v129_v17  ;;  %v151_v17 = vand.u32 2147483648, %v1160_v38  ;;  %vm146_vm12 = vweird.f32 %v1215_v23 }
 0x107   :  { %833 = vrcp.f32 %v1225_v44  ;;  %vm147_vm4 = vmor %vm145_vm7, %vm146_vm12  ;;  %vm1304_vm5 = vcmp.eq.f32.partialorder %v179_v20, 8.507059e+37  ;;  %v480_v31 = vor.u32 1.1754944e-38, %v1569_v9  ;;  %vm478_vm7 = vcmp.eq.f32.partialorder %v477_v6, 8.507059e+37 }
 0x108   :  { %v832_v10 = vpop.eup %831  ;;  %v142_v11 = vsub.f32 1.0, %v141_v43  ;;  %v732_v8 = vpop.xlane.xlu1 %731  ;;  %v138_v43 = vsel %vm1211_vm0, %v137_v19, %v133_v12  ;;  %835 = vrcp.f32 %v1183_v0  ;;  %vm1296_vm0 = vmor %vm160_vm3, %vm161_vm11  ;;  %vm503_vm12 = vweird.f32 %v1308_v57 }
 0x109   :  { %v171_v25 = vmul.f32 %v832_v10, %v1181_v62  ;;  %vm176_vm10 = vweird.f32 %v832_v10  ;;  %v1266_v21 = vsub.f32 %v953_v52, %v732_v8  ;;  %v139_v19 = vmul.f32 %v926_v28, %v138_v43 }
 0x10a   :  { %v143_v13 = vmul.f32 %v1215_v23, %v142_v11  ;;  %v159_v52 = vadd.f32 %v1176_v58, %v158_v3  ;;  %vm1285_vm15 = vmor %vm175_vm9, %vm176_vm10  ;;  %v152_v3 = vor.u32 1.1754944e-38, %v151_v17  ;;  %vm205_vm9 = vweird.f32 %v1183_v0 }
 0x10b   :  { %v172_v61 = vsub.f32 1.0, %v171_v25  ;;  %v149_v25 = vand.u32 2147483647, %v1160_v38  ;;  %v734_v62 = vmul.f32 1.442695, %v1266_v21  ;;  %v452_v22 = vmul.f32 %v1164_v39, %v139_v19 }
 0x10c   :  { %v144_v48 = vadd.f32 %v1215_v23, %v143_v13  ;;  %v196_v19 = vand.u32 2147483648, %v1225_v44 }
 0x10d   :  { %v1268_v11 = vpop.eup %833  ;;  %v173_v18 = vmul.f32 %v832_v10, %v172_v61  ;;  %v472_v61 = vadd.f32 %v1156_v35, %v471_v42  ;;  %837 = vpow2.f32 %v734_v62  ;;  %vm150_vm3 = vcmp.eq.f32.partialorder %v149_v25, 8.507059e+37 }
 0x10e   :  { %v186_v28 = vmul.f32 %v1268_v11, %v1225_v44  ;;  %v148_v17 = vsel %vm147_vm4, %v1215_v23, %v144_v48  ;;  %v163_v42 = vsel %vm1296_vm0, %v1176_v58, %v159_v52  ;;  %v566_v20 = vperm.slane %v452_v22, 0  ;;  %v1326_v48 = vpop.eup %835 }
 0x10f   :  { %v174_v43 = vadd.f32 %v832_v10, %v173_v18  ;;  %v153_v26 = vsel %vm150_vm3, %v152_v3, %v148_v17  ;;  %v476_v39 = vsel %vm1277_vm13, %v1156_v35, %v472_v61  ;;  %v168_v22 = vsel %vm1253_vm8, %v1238_v4, %v163_v42 }
 0x110   :  { %v187_v53 = vsub.f32 1.0, %v186_v28  ;;  %v154_v34 = vmul.f32 %v934_v41, %v153_v26  ;;  %v582_v58 = vmul.f32 %v1031_v60, %v566_v20  ;;  %839 = vrcp.f32 %v1308_v57 }
 0x111   :  { %v178_v18 = vsel %vm1285_vm15, %v832_v10, %v174_v43  ;;  %v1340_v35 = vmax.f32 %v1147_v2, %v1570_v63  ;;  %v1571_v41 = vsel %vm1203_vm14, %v1117_v59, %v1199_v15  ;;  %v481_v60 = vsel %vm478_vm7, %v480_v31, %v476_v39  ;;  %v1399_v39 = vld [vmem:[%s1533_s1 + $0x70] sm:$0xff] }
 0x112   :  { %v188_v23 = vmul.f32 %v1268_v11, %v187_v53  ;;  %v183_v10 = vsel %vm1304_vm5, %v182_v56, %v178_v18  ;;  %v467_v53 = vmul.f32 %v1221_v30, %v154_v34  ;;  %v496_v56 = vsel %vm1314_vm6, %v1241_v7, %v1571_v41 }
 0x113   :  { %v838_v4 = vpop.eup %837  ;;  %v201_v6 = vmul.f32 %v1326_v48, %v1183_v0  ;;  %v598_v2 = vsel %vm245_vm2, %v582_v58, 0.0  ;;  %v184_v30 = vmul.f32 %v940_v47, %v183_v10  ;;  %v169_v5 = vmul.f32 %v930_v36, %v168_v22  ;;  %v1415_v22 = vld [vmem:[%s1533_s1 + $0x78] sm:$0xff] }
 0x114   :  { %v189_v50 = vadd.f32 %v1268_v11, %v188_v23  ;;  %vm191_vm14 = vweird.f32 %v1268_v11  ;;  %599 = vadd.xlane.f32.xlu2 %v598_v2  ;;  %v736_v59 = vsel %vm729_vm1, %v838_v4, 0.0  ;;  %v567_v15 = vperm.slane %v467_v53, 0 }
 0x115   :  { %v194_v7 = vand.u32 2147483647, %v1225_v44  ;;  %737 = vadd.xlane.f32.xlu0 %v736_v59  ;;  %v482_v12 = vmul.f32 %v481_v60, %v169_v5  ;;  %v330_v52 = vsub.f32 %v1075_v51, %v1340_v35  ;;  %vm190_vm8 = vweird.f32 %v1225_v44 }
 0x116   :  { %v585_v36 = vmul.f32 %v1043_v29, %v567_v15  ;;  %v584_v47 = vmul.f32 %v1041_v14, %v567_v15  ;;  %v331_v25 = vsub.f32 %v1080_v54, %v1340_v35  ;;  %v840_v8 = vpop.eup %839  ;;  %v202_v28 = vsub.f32 1.0, %v201_v6  ;;  %vm1372_vm10 = vmor %vm190_vm8, %vm191_vm14 }
 0x117   :  { %v583_v51 = vmul.f32 %v1033_v1, %v566_v20  ;;  %v1377_v44 = vmul.f32 %v496_v56, %v184_v30  ;;  %v568_v14 = vperm.slane %v482_v12, 0  ;;  %v193_v54 = vsel %vm1372_vm10, %v1268_v11, %v189_v50  ;;  %v1422_v56 = vpop.xlane.xlu2 %120 }
 0x118   :  { %v604_v29 = vsel %vm245_vm2, %v584_v47, 0.0  ;;  %v499_v3 = vmul.f32 %v840_v8, %v1308_v57  ;;  %vm195_vm11 = vcmp.eq.f32.partialorder %v194_v7, 8.507059e+37  ;;  %v197_v43 = vor.u32 1.1754944e-38, %v196_v19 }
 0x119   :  { %v607_v62 = vsel %vm245_vm2, %v585_v36, 0.0  ;;  %605 = vadd.xlane.f32.xlu1 %v604_v29  ;;  %vm504_vm13 = vweird.f32 %v840_v8  ;;  %v507_v1 = vand.u32 2147483647, %v1308_v57  ;;  %v509_v17 = vand.u32 2147483648, %v1308_v57 }
 0x11a   :  { %v500_v61 = vsub.f32 1.0, %v499_v3  ;;  %v209_v18 = vand.u32 2147483647, %v1183_v0  ;;  %v569_v38 = vperm.slane %v1377_v44, 0  ;;  %v198_v11 = vsel %vm195_vm11, %v197_v43, %v193_v54  ;;  %vm1406_vm0 = vmor %vm503_vm12, %vm504_vm13 }
 0x11b   :  { %v1391_v42 = vadd.f32 %v418_v16, %v1174_v32  ;;  %v203_v9 = vmul.f32 %v1326_v48, %v202_v28  ;;  %v601_v31 = vsel %vm245_vm2, %v583_v51, 0.0  ;;  %v587_v20 = vmul.f32 %v1061_v55, %v568_v14 }
 0x11c   :  { %608 = vadd.xlane.f32.xlu2 %v607_v62  ;;  %v501_v26 = vmul.f32 %v840_v8, %v500_v61  ;;  %vm206_vm15 = vweird.f32 %v1326_v48  ;;  %v211_v23 = vand.u32 2147483648, %v1183_v0  ;;  %v510_v34 = vor.u32 1.1754944e-38, %v509_v17 }
 0x11d   :  { %602 = vadd.xlane.f32.xlu0 %v601_v31  ;;  %841 = vrcp.f32 %v1391_v42  ;;  %v199_v55 = vmul.f32 %v944_v49, %v198_v11  ;;  %vm508_vm4 = vcmp.eq.f32.partialorder %v507_v1, 8.507059e+37  ;;  %v358_v58 = vmul.f32 1.442695, %v330_v52  ;;  %vm1431_vm5 = vmor %vm205_vm9, %vm206_vm15 }
 0x11e   :  { %v502_v10 = vadd.f32 %v840_v8, %v501_v26  ;;  %v588_v63 = vmul.f32 %v1047_v33, %v569_v38  ;;  %v586_v57 = vmul.f32 %v1057_v46, %v568_v14  ;;  %v360_v35 = vmul.f32 1.442695, %v331_v25 }
 0x11f   :  { %v309_v53 = vsel %vm245_vm2, %v1399_v39, -inf  ;;  %v204_v41 = vadd.f32 %v1326_v48, %v203_v9  ;;  %v613_v49 = vsel %vm245_vm2, %v587_v20, 0.0  ;;  %843 = vpow2.f32 %v358_v58 }
 0x120   :  { %v506_v60 = vsel %vm1406_vm0, %v840_v8, %v502_v10  ;;  %845 = vpow2.f32 %v360_v35  ;;  %v310_v16 = vsel %vm245_vm2, %v1415_v22, -inf  ;;  %vm1437_vm3 = vcmp.eq.f32.partialorder %v209_v18, 8.507059e+37 }
 0x121   :  { %614 = vadd.xlane.f32.xlu1 %v613_v49  ;;  %v511_v46 = vsel %vm508_vm4, %v510_v34, %v506_v60  ;;  %v311_v2 = vmax.f32 %v309_v53, %v310_v16  ;;  %v212_v5 = vor.u32 1.1754944e-38, %v211_v23  ;;  %847 = vrcp.f32 %v1422_v56 }
 0x122   :  { %v512_v6 = vmul.f32 %v511_v46, %v199_v55  ;;  %v616_v0 = vsel %vm245_vm2, %v588_v63, 0.0  ;;  %v610_v50 = vsel %vm245_vm2, %v586_v57, 0.0  ;;  %v208_v15 = vsel %vm1431_vm5, %v1326_v48, %v204_v41  ;;  %v1582_v57 = vld [vmem:[#allocation7_spill] sm:$0xff] }
 0x123   :  { %v842_v30 = vpop.eup %841  ;;  %v312_v19 = vrot.slane %v311_v2, 4  ;;  %vm518_vm6 = vweird.f32 %v1391_v42  ;;  %v522_v12 = vand.u32 2147483647, %v1391_v42  ;;  %v524_v52 = vand.u32 2147483648, %v1391_v42 }
 0x124   :  { %617 = vadd.xlane.f32.xlu2 %v616_v0  ;;  %v570_v59 = vperm.slane %v512_v6, 0  ;;  %v514_v7 = vmul.f32 %v842_v30, %v1391_v42  ;;  %vm519_vm7 = vweird.f32 %v842_v30  ;;  %v213_v13 = vsel %vm1437_vm3, %v212_v5, %v208_v15 }
 0x125   :  { %611 = vadd.xlane.f32.xlu0 %v610_v50  ;;  %v1451_v36 = vpop.eup %843  ;;  %v313_v8 = vmax.f32 %v311_v2, %v312_v19  ;;  %v589_v29 = vmul.f32 %v1053_v40, %v569_v38  ;;  %vm1467_vm14 = vmor %vm518_vm6, %vm519_vm7  ;;  %v525_v3 = vor.u32 1.1754944e-38, %v524_v52  ;;  %v214_v61 = vmul.f32 %v938_v45, %v213_v13 }
 0x126   :  { %v590_v47 = vmul.f32 %v1099_v27, %v570_v59  ;;  %v515_v25 = vsub.f32 1.0, %v514_v7  ;;  %v1454_v28 = vpop.eup %845  ;;  %v591_v48 = vmul.f32 %v1105_v37, %v570_v59  ;;  %v420_v51 = vsel %vm245_vm2, %v1451_v36, 0.0 }
 0x127   :  { %v421_v27 = vsel %vm245_vm2, %v1454_v28, 0.0  ;;  %v848_v54 = vpop.eup %847  ;;  %v314_v62 = vrot.slane %v313_v8, 2  ;;  %vm523_vm8 = vcmp.eq.f32.partialorder %v522_v12, 8.507059e+37  ;;  %v619_v11 = vsel %vm245_vm2, %v589_v29, 0.0 }
 0x128   :  { %v622_v44 = vsel %vm245_vm2, %v590_v47, 0.0  ;;  %v516_v14 = vmul.f32 %v842_v30, %v515_v25  ;;  %v422_v43 = vadd.f32 %v421_v27, %v420_v51  ;;  %v625_v40 = vsel %vm245_vm2, %v591_v48, 0.0  ;;  %v1583_v51 = vld [vmem:[#allocation5_spill] sm:$0xff] }
 0x129   :  { %623 = vadd.xlane.f32.xlu1 %v622_v44  ;;  %v315_v18 = vmax.f32 %v313_v8, %v314_v62  ;;  %v216_v38 = vmul.f32 %v848_v54, %v1422_v56  ;;  %vm220_vm9 = vweird.f32 %v1422_v56  ;;  %vm221_vm10 = vweird.f32 %v848_v54 }
 0x12a   :  { %v517_v1 = vadd.f32 %v842_v30, %v516_v14  ;;  %v423_v17 = vrot.slane %v422_v43, 4  ;;  %v224_v4 = vand.u32 2147483647, %v1422_v56  ;;  %vm222_vm11 = vmor %vm220_vm9, %vm221_vm10 }
 0x12b   :  { %v316_v20 = vrot.slane %v315_v18, 1  ;;  %v217_v32 = vsub.f32 1.0, %v216_v38 }
 0x12c   :  { %626 = vadd.xlane.f32.xlu2 %v625_v40  ;;  %v521_v42 = vsel %vm1467_vm14, %v842_v30, %v517_v1  ;;  %v424_v31 = vadd.f32 %v423_v17, %v422_v43  ;;  %vm225_vm12 = vcmp.eq.f32.partialorder %v224_v4, 8.507059e+37 }
 0x12d   :  { %620 = vadd.xlane.f32.xlu0 %v619_v11  ;;  %v526_v9 = vsel %vm523_vm8, %v525_v3, %v521_v42  ;;  %v317_v23 = vmax.f32 %v315_v18, %v316_v20  ;;  %v218_v60 = vmul.f32 %v848_v54, %v217_v32 }
 0x12e   :  { %v527_v26 = vmul.f32 %v526_v9, %v214_v61  ;;  %v425_v45 = vrot.slane %v424_v31, 2 }
 0x12f   :  { %v332_v10 = vsub.f32 %v1399_v39, %v317_v23  ;;  %v333_v58 = vsub.f32 %v1415_v22, %v317_v23  ;;  %v124_v39 = vpop.xlane.xlu0 %123  ;;  %v219_v22 = vadd.f32 %v848_v54, %v218_v60 }
 0x130   :  { %v571_v34 = vperm.slane %v527_v26, 0  ;;  %v426_v55 = vadd.f32 %v425_v45, %v424_v31  ;;  %vm235_vm5 = vweird.f32 %v124_v39  ;;  %v241_v42 = vand.u32 2147483648, %v124_v39 }
 0x131   :  { %v362_v41 = vmul.f32 1.442695, %v332_v10  ;;  %v364_v49 = vmul.f32 1.442695, %v333_v58  ;;  %v223_v5 = vsel %vm222_vm11, %v848_v54, %v219_v22  ;;  %v887_v54 = vmov 0   ;;  %v35_v22 = vld [vmem:[%s1534_s2] sm:$0xff] }
 0x132   :  { %v593_v63 = vmul.f32 %v1092_v24, %v571_v34  ;;  %v592_v35 = vmul.f32 %v1582_v57, %v571_v34  ;;  %v427_v53 = vrot.slane %v426_v55, 1  ;;  %v226_v24 = vand.u32 2147483648, %v1422_v56  ;;  %775 = vset.pattern.permute.xlu1 %v887_v54  ;;  %776 = vset.pattern.permute.xlu0 %v887_v54  ;;  %v1584_v57 = vld [vmem:[#allocation6_spill] sm:$0xff]  ;;  %s889_s2 = smov [#allocation2]  }
 0x133   :  { %849 = vpow2.f32 %v362_v41  ;;  %v239_v20 = vand.u32 2147483647, %v124_v39  ;;  %v242_v23 = vor.u32 1.1754944e-38, %v241_v42  ;;  %vm713_vm11 = vcmask 1041409   ;;  %s760_s22 = sshll.u32 %s889_s2, 4  ;;  %s761_s22 = int_to_ptr.vmem [resolvable:$true] %s760_s22 }
 0x134   :  { %v631_v33 = vsel %vm245_vm2, %v593_v63, 0.0  ;;  %v628_v46 = vsel %vm245_vm2, %v592_v35, 0.0  ;;  %v428_v16 = vadd.f32 %v427_v53, %v426_v55  ;;  %851 = vpow2.f32 %v364_v49 }
 0x135   :  { %632 = vadd.xlane.f32.xlu2 %v631_v33  ;;  %629 = vadd.xlane.f32.xlu1 %v628_v46  ;;  %v227_v2 = vor.u32 1.1754944e-38, %v226_v24  ;;  %vm240_vm7 = vcmp.eq.f32.partialorder %v239_v20, 8.507059e+37 }
 0x136   :  { %853 = vrcp.f32 %v428_v16  ;;  %vm533_vm13 = vweird.f32 %v428_v16  ;;  %v539_v56 = vand.u32 2147483648, %v428_v16  ;;  %v537_v47 = vand.u32 2147483647, %v428_v16 }
 0x137   :  { %855 = vrcp.f32 %v124_v39  ;;  %v228_v19 = vsel %vm225_vm12, %v227_v2, %v223_v5  ;;  %vm715_vm12 = vcmask 1042434  }
 0x138   :  { %v229_v44 = vmul.f32 %v1583_v51, %v228_v19  ;;  %v540_v29 = vor.u32 1.1754944e-38, %v539_v56  ;;  %vm538_vm4 = vcmp.eq.f32.partialorder %v537_v47, 8.507059e+37 }
 0x139   :  { %v1486_v6 = vpop.eup %849 }
 0x13a   :  { %v1488_v30 = vpop.eup %851  ;;  %v429_v0 = vsel %vm245_vm2, %v1486_v6, 0.0 }
 0x13b   :  { %v430_v59 = vsel %vm245_vm2, %v1488_v30, 0.0 }
 0x13c   :  { %v854_v50 = vpop.eup %853  ;;  %v431_v7 = vadd.f32 %v430_v59, %v429_v0 }
 0x13d   :  { %v529_v15 = vmul.f32 %v854_v50, %v428_v16  ;;  %v856_v12 = vpop.eup %855  ;;  %vm534_vm15 = vweird.f32 %v854_v50 }
 0x13e   :  { %v432_v25 = vrot.slane %v431_v7, 4  ;;  %v231_v13 = vmul.f32 %v856_v12, %v124_v39  ;;  %vm535_vm0 = vmor %vm533_vm13, %vm534_vm15  ;;  %vm236_vm3 = vweird.f32 %v856_v12  ;;  %vm717_vm13 = vcmask 1043459  }
 0x13f   :  { %v530_v52 = vsub.f32 1.0, %v529_v15  ;;  %vm237_vm6 = vmor %vm235_vm5, %vm236_vm3  ;;  %vm719_vm15 = vcmask 1044484   ;;  %vm725_vm5 = vcmask 1047559  }
 0x140   :  { %v433_v48 = vadd.f32 %v432_v25, %v431_v7  ;;  %v232_v43 = vsub.f32 1.0, %v231_v13 }
 0x141   :  { %v531_v8 = vmul.f32 %v854_v50, %v530_v52 }
 0x142   :  { %v434_v27 = vrot.slane %v433_v48, 2  ;;  %v233_v18 = vmul.f32 %v856_v12, %v232_v43 }
 0x143   :  { %v532_v14 = vadd.f32 %v854_v50, %v531_v8 }
 0x144   :  { %v435_v3 = vadd.f32 %v434_v27, %v433_v48  ;;  %v234_v31 = vadd.f32 %v856_v12, %v233_v18 }
 0x145   :  { %v536_v37 = vsel %vm535_vm0, %v854_v50, %v532_v14  ;;  %vm721_vm0 = vcmask 1045509  }
 0x146   :  { %v541_v62 = vsel %vm538_vm4, %v540_v29, %v536_v37  ;;  %v436_v1 = vrot.slane %v435_v3, 1  ;;  %v238_v32 = vsel %vm237_vm6, %v856_v12, %v234_v31  ;;  %v646_v12 = vlaneseq }
 0x147   :  { %v542_v61 = vmul.f32 %v541_v62, %v229_v44  ;;  %v243_v10 = vsel %vm240_vm7, %v242_v23, %v238_v32  ;;  %vm723_vm4 = vcmask 1046534   ;;  %vm753_vm6 = vcmask 0  }
 0x148   :  { %v437_v17 = vadd.f32 %v436_v1, %v435_v3  ;;  %v244_v35 = vmul.f32 %v1584_v57, %v243_v10  ;;  %v1507_v52 = vand.u32 127, %v646_v12 }
 0x149   :  { %v572_v40 = vperm.slane %v542_v61, 0 }
 0x14a   :  { %857 = vrcp.f32 %v437_v17  ;;  %v554_v34 = vand.u32 2147483648, %v437_v17  ;;  %vm548_vm14 = vweird.f32 %v437_v17  ;;  %v688_v25 = vadd.s32 4294967288, %v1507_v52 }
 0x14b   :  { %v594_v38 = vmul.f32 %v1451_v36, %v572_v40  ;;  %v595_v11 = vmul.f32 %v1454_v28, %v572_v40  ;;  %v552_v28 = vand.u32 2147483647, %v437_v17 }
 0x14c   :  { %v555_v63 = vor.u32 1.1754944e-38, %v554_v34 }
 0x14d   :  { %v634_v9 = vsel %vm245_vm2, %v594_v38, 0.0  ;;  %v637_v26 = vsel %vm245_vm2, %v595_v11, 0.0  ;;  %vm553_vm10 = vcmp.eq.f32.partialorder %v552_v28, 8.507059e+37 }
 0x14e   :  { %635 = vadd.xlane.f32.xlu0 %v634_v9  ;;  %638 = vadd.xlane.f32.xlu1 %v637_v26 }
 0x150   :  { %v858_v45 = vpop.eup %857 }
 0x151   :  { %v544_v36 = vmul.f32 %v858_v45, %v437_v17  ;;  %vm549_vm8 = vweird.f32 %v858_v45 }
 0x152   :  { %vm550_vm9 = vmor %vm548_vm14, %vm549_vm8 }
 0x153   :  { %v545_v55 = vsub.f32 1.0, %v544_v36 }
 0x155   :  { %v546_v58 = vmul.f32 %v858_v45, %v545_v55 }
 0x157   :  { %v547_v53 = vadd.f32 %v858_v45, %v546_v58 }
 0x159   :  { %v551_v41 = vsel %vm550_vm9, %v858_v45, %v547_v53 }
 0x15a   :  { %v556_v49 = vsel %vm553_vm10, %v555_v63, %v551_v41 }
 0x15b   :  { %v557_v60 = vmul.f32 %v556_v49, %v244_v35 }
 0x15d   :  { %v573_v33 = vperm.slane %v557_v60, 0 }
 0x15f   :  { %v596_v46 = vmul.f32 %v1486_v6, %v573_v33  ;;  %v597_v16 = vmul.f32 %v1488_v30, %v573_v33 }
 0x161   :  { %v640_v24 = vsel %vm245_vm2, %v596_v46, 0.0  ;;  %v643_v39 = vsel %vm245_vm2, %v597_v16, 0.0  ;;  %vm690_vm2 = vcmask 130112  }
 0x162   :  { %641 = vadd.xlane.f32.xlu2 %v640_v24  ;;  %644 = vadd.xlane.f32.xlu0 %v643_v39 }
 0x167   :  { %649 = vperm.xlu1 %775, %v35_v22  }
 0x187   :  { %v600_v4 = vpop.xlane.xlu2 %599 }
 0x188   :  { %v738_v2 = vpop.xlane.xlu0 %737  ;;  %v655_v51 = vmul.f32 0.5, %v600_v4 }
 0x189   :  { %859 = vlog2.f32 %v738_v2 }
 0x18a   :  { %v687_v1 = vperm.slane %v655_v51, %v1507_v52 }
 0x18c   :  { %v606_v5 = vpop.xlane.xlu1 %605 }
 0x18d   :  { %v657_v29 = vmul.f32 0.5, %v606_v5 }
 0x18f   :  { %v609_v0 = vpop.xlane.xlu2 %608  ;;  %v692_v17 = vperm.slane %v657_v29, %v1507_v52  ;;  %v860_v55 = vpop.eup %859 }
 0x190   :  { %v603_v50 = vpop.xlane.xlu0 %602  ;;  %v658_v44 = vmul.f32 0.5, %v609_v0  ;;  %v740_v39 = vmul.f32 0.6931472, %v860_v55 }
 0x191   :  { %v656_v47 = vmul.f32 0.5, %v603_v50 }
 0x192   :  { %v693_v40 = vperm.slane %v658_v44, %v688_v25 }
 0x193   :  { %v689_v54 = vperm.slane %v656_v47, %v688_v25 }
 0x194   :  { %v615_v59 = vpop.xlane.xlu1 %614  ;;  %v694_v36 = vsel %vm690_vm2, %v693_v40, %v692_v17 }
 0x195   :  { %v660_v27 = vmul.f32 0.5, %v615_v59  ;;  %v691_v31 = vsel %vm690_vm2, %v689_v54, %v687_v1  ;;  %v888_v59 = vmov 0.0  }
 0x196   :  { %v714_v28 = vsel %vm713_vm11, %v694_v36, %v691_v31 }
 0x197   :  { %v618_v6 = vpop.xlane.xlu2 %617  ;;  %v696_v38 = vperm.slane %v660_v27, %v688_v25 }
 0x198   :  { %v612_v15 = vpop.xlane.xlu0 %611  ;;  %v661_v37 = vmul.f32 0.5, %v618_v6 }
 0x199   :  { %v659_v8 = vmul.f32 0.5, %v612_v15 }
 0x19a   :  { %v698_v20 = vperm.slane %v661_v37, %v1507_v52 }
 0x19b   :  { %v695_v43 = vperm.slane %v659_v8, %v1507_v52 }
 0x19c   :  { %v624_v30 = vpop.xlane.xlu1 %623 }
 0x19d   :  { %v663_v42 = vmul.f32 0.5, %v624_v30  ;;  %v697_v26 = vsel %vm690_vm2, %v696_v38, %v695_v43 }
 0x19e   :  { %v716_v53 = vsel %vm715_vm12, %v697_v26, %v714_v28 }
 0x19f   :  { %v627_v7 = vpop.xlane.xlu2 %626  ;;  %v701_v58 = vperm.slane %v663_v42, %v1507_v52 }
 0x1a0   :  { %v621_v19 = vpop.xlane.xlu0 %620  ;;  %v664_v11 = vmul.f32 0.5, %v627_v7 }
 0x1a1   :  { %v662_v14 = vmul.f32 0.5, %v621_v19  ;;  %v741_v19 = vsub.f32 %v740_v39, %v1266_v21 }
 0x1a2   :  { %v702_v10 = vperm.slane %v664_v11, %v688_v25 }
 0x1a3   :  { %v699_v18 = vperm.slane %v662_v14, %v688_v25 }
 0x1a4   :  { %v703_v22 = vsel %vm690_vm2, %v702_v10, %v701_v58 }
 0x1a5   :  { %v700_v34 = vsel %vm690_vm2, %v699_v18, %v698_v20 }
 0x1a6   :  { %v718_v60 = vsel %vm717_vm13, %v700_v34, %v716_v53 }
 0x1a7   :  { %v720_v0 = vsel %vm719_vm15, %v703_v22, %v718_v60 }
 0x1a8   :  { %v630_v56 = vpop.xlane.xlu1 %629  ;;  %v633_v48 = vpop.xlane.xlu2 %632 }
 0x1a9   :  { %v666_v62 = vmul.f32 0.5, %v633_v48  ;;  %v665_v61 = vmul.f32 0.5, %v630_v56 }
 0x1ab   :  { %v705_v45 = vperm.slane %v666_v62, %v688_v25  ;;  %v704_v23 = vperm.slane %v665_v61, %v1507_v52 }
 0x1ad   :  { %v706_v33 = vsel %vm690_vm2, %v705_v45, %v704_v23 }
 0x1ae   :  { %v722_v50 = vsel %vm721_vm0, %v706_v33, %v720_v0 }
 0x1c1   :  { %v636_v13 = vpop.xlane.xlu0 %635  ;;  %v639_v3 = vpop.xlane.xlu1 %638 }
 0x1c2   :  { %v668_v9 = vmul.f32 0.5, %v639_v3  ;;  %v667_v32 = vmul.f32 0.5, %v636_v13 }
 0x1c4   :  { %v708_v57 = vperm.slane %v668_v9, %v688_v25  ;;  %v707_v46 = vperm.slane %v667_v32, %v1507_v52 }
 0x1c6   :  { %v709_v4 = vsel %vm690_vm2, %v708_v57, %v707_v46 }
 0x1c7   :  { %v724_v15 = vsel %vm723_vm4, %v709_v4, %v722_v50 }
 0x1d5   :  { %v642_v63 = vpop.xlane.xlu2 %641  ;;  %v645_v35 = vpop.xlane.xlu0 %644 }
 0x1d6   :  { %v669_v41 = vmul.f32 0.5, %v642_v63  ;;  %v670_v49 = vmul.f32 0.5, %v645_v35 }
 0x1d8   :  { %v710_v16 = vperm.slane %v669_v41, %v1507_v52  ;;  %v711_v24 = vperm.slane %v670_v49, %v688_v25 }
 0x1d9   :  { %v650_v2 = vpop.permute.xlu1 %649 }
 0x1da   :  { %v712_v5 = vsel %vm690_vm2, %v711_v24, %v710_v16  ;;  %vm651_vm3 = vcmp.eq.s32.totalorder %v1507_v52, %v650_v2 }
 0x1db   :  { %v771_v6 = vsel %vm651_vm3, 1.0, %v888_v59  ;;  %v726_v7 = vsel %vm725_vm5, %v712_v5, %v724_v15 }
 0x1dc   :  { %v654_v30 = vmul.f32 0.5, %v771_v6 }
 0x1de   :  { %v728_v56 = vadd.f32 %v726_v7, %v654_v30 }
 0x1e0   :  { %v742_v12 = vmul.f32 %v741_v19, %v728_v56 }
 0x1e2   :  { %v743_v47 = vsel %vm729_vm1, %v742_v12, 0.0 }
 0x1e3   :  { %744 = vadd.xlane.f32.xlu2 %v743_v47 }
 0x256   :  { %v745_v25 = vpop.xlane.xlu2 %744 }
 0x257   :  { %v746_v8 = vrot.slane %v745_v25, 4 }
 0x259   :  { %v747_v48 = vadd.f32 %v746_v8, %v745_v25 }
 0x25b   :  { %v748_v13 = vrot.slane %v747_v48, 2 }
 0x25d   :  { %v749_v51 = vadd.f32 %v748_v13, %v747_v48 }
 0x25f   :  { %v750_v44 = vrot.slane %v749_v51, 1 }
 0x261   :  { %v751_v52 = vadd.f32 %v750_v44, %v749_v51 }
 0x263   :  { %v752_v21 = vmul.f32 0.125, %v751_v52 }
 0x265   :  { %754 = vst.msk [vmem:[#allocation2] sm:$0x1] %vm753_vm6, %v752_v21 }
 0x266   :  { %765 = dma.vmem_to_hbm [thread:$0]  %s761_s22, 16, %s763_s25, [#allocation3]  }
 0x267   :  { %885 = dma.done.wait [#allocation3], 16  }
 0x268   :  { %886 = vsyncadd [#allocation3], 4294967280 }
 0x269   :  { %770 = vsyncpa [#allocation3], 1 }

</bundles_post_ra>
